<compile_context>
chip_gen: v6e
topology: v6e:2x2x1
jax: 0.10.0
libtpu: 0.0.40
codegen_flags: <defaults>
</compile_context>

<pallas_src>
import functools

import jax
import jax.numpy as jnp
from jax.experimental import pallas as pl
from jax.experimental.pallas import tpu as pltpu

_MIB = 1024 * 1024


def _round_up(x, m):
    return ((x + m - 1) // m) * m


def _device_kind():
    try:
        return jax.devices()[0].device_kind.lower()
    except Exception:
        return ""


def _is_v5e(kind=None):
    kind = _device_kind() if kind is None else kind
    return ("v5 lite" in kind) or ("v5e" in kind) or ("v5litepod" in kind)


def _vmem_cap_bytes():
    kind = _device_kind()
    if "v7" in kind:
        return 56 * _MIB     # v7x: 64 MiB physical per TC, leave headroom
    if _is_v5e(kind):
        return 100 * _MIB    # v5e: 128 MiB physical
    return 110 * _MIB        # v6e / default: 128 MiB physical


# --------------------------------------------------------------------------- #
# Kernels
# --------------------------------------------------------------------------- #
def _linear_relu_kernel(x_ref, w_ref, b_ref, o_ref):
    y = jnp.dot(x_ref[...].astype(jnp.bfloat16), w_ref[...],
                preferred_element_type=jnp.float32)
    o_ref[...] = jnp.maximum(y + b_ref[...], 0.0).astype(o_ref.dtype)


def _gcnii_layers_kernel(a_ref, hinit_ref, w_ref, b_ref, o_ref,
                         h_even, h_odd, *, tm, num_layers, a_resident, split_update):
    """Grid = (num_layers, num_row_tiles); layer axis OUTER, row axis INNER (both serial).

    The h state is kept resident in bf16 VMEM and ping-ponged between h_even / h_odd
    per layer so that every row tile of layer l reads the fully-written h of layer l-1.
    """
    l = pl.program_id(0)
    i = pl.program_id(1)
    row0 = pl.multiple_of(i * tm, tm)
    hdim = hinit_ref.shape[1]

    # Initialize the h state once, before the first layer's first row tile.
    @pl.when(jnp.logical_and(l == 0, i == 0))
    def _():
        h_even[...] = hinit_ref[...]

    def step(h_src, h_dst):
        if a_resident:
            a_tile = a_ref[pl.ds(row0, tm), :]   # (tm, n_pad) slice of VMEM-resident A_hat
        else:
            a_tile = a_ref[...]                  # (tm, n_pad) streamed row tile
        # GCN propagation: bf16 x bf16 MXU matmul, f32 accumulation. h_src is already
        # bf16 so no full-state cast is needed.
        p = jnp.dot(a_tile, h_src[...], preferred_element_type=jnp.float32)
        h0_tile = hinit_ref[pl.ds(row0, tm), :]  # bf16
        bias = b_ref[0]
        if split_update:
            # v5e: two K=H dots (MXU is 128-deep there), no (tm, 2H) concat temp.
            w = w_ref[0]
            out = (jnp.dot(p.astype(jnp.bfloat16), w[:hdim],
                           preferred_element_type=jnp.float32)
                   + jnp.dot(h0_tile, w[hdim:],
                             preferred_element_type=jnp.float32)
                   + bias)
        else:
            # v6e/v7x: one fused K=2H matmul with the pre-stacked weight
            #   [p, h0] @ [(1-a)(I+W1) ; a(I+W2)] + bias
            z = jnp.concatenate([p.astype(jnp.bfloat16), h0_tile], axis=1)
            out = jnp.dot(z, w_ref[0], preferred_element_type=jnp.float32) + bias
        # relu(conv) + dense residual (sliced from resident state), accumulated in f32,
        # cast to bf16 once on store.
        h_prev_tile = h_src[pl.ds(row0, tm), :].astype(jnp.float32)
        new = jnp.maximum(out, 0.0) + h_prev_tile
        new_bf16 = new.astype(jnp.bfloat16)
        h_dst[pl.ds(row0, tm), :] = new_bf16

        @pl.when(l == num_layers - 1)
        def _():
            o_ref[pl.ds(row0, tm), :] = new_bf16

    @pl.when(l % 2 == 0)
    def _():
        step(h_even, h_odd)

    @pl.when(l % 2 == 1)
    def _():
        step(h_odd, h_even)


def _linear_logsoftmax_kernel(x_ref, w_ref, b_ref, o_ref):
    logits = jnp.dot(x_ref[...].astype(jnp.bfloat16), w_ref[...],
                     preferred_element_type=jnp.float32) + b_ref[...]
    m = jnp.max(logits, axis=-1, keepdims=True)
    lse = jnp.log(jnp.sum(jnp.exp(logits - m), axis=-1, keepdims=True)) + m
    o_ref[...] = (logits - lse).astype(o_ref.dtype)


# --------------------------------------------------------------------------- #
# Wrappers (pallas_call plumbing)
# --------------------------------------------------------------------------- #
def linear_relu(x, w, b, *, tm):
    n, c_in = x.shape
    c_out = w.shape[1]
    assert n % tm == 0
    return pl.pallas_call(
        _linear_relu_kernel,
        out_shape=jax.ShapeDtypeStruct((n, c_out), jnp.bfloat16),
        grid_spec=pltpu.PrefetchScalarGridSpec(
            num_scalar_prefetch=0,
            grid=(n // tm,),
            in_specs=[
                pl.BlockSpec((tm, c_in), lambda i: (i, 0)),
                pl.BlockSpec((c_in, c_out), lambda i: (0, 0)),
                pl.BlockSpec((1, c_out), lambda i: (0, 0)),
            ],
            out_specs=pl.BlockSpec((tm, c_out), lambda i: (i, 0)),
        ),
        compiler_params=pltpu.CompilerParams(dimension_semantics=("parallel",)),
    )(x, w.astype(jnp.bfloat16), b)


def gcnii_layers(a_hat_bf16, h_init_bf16, w_stack_bf16, b_stack, *, tm):
    n_pad, hdim = h_init_bf16.shape
    num_layers = w_stack_bf16.shape[0]
    assert n_pad % tm == 0
    num_row_tiles = n_pad // tm

    bf16, f32 = 2, 4
    cap = _vmem_cap_bytes()
    state_bytes = 2 * n_pad * hdim * bf16                        # bf16 ping-pong scratch
    resident_io = 2 * n_pad * hdim * bf16                        # h0 + output, single copy each
    weight_bytes = 2 * ((2 * hdim) * hdim * bf16 + hdim * f32)   # double-buffered W / bias
    work_bytes = 8 * tm * max(n_pad, 2 * hdim) * f32             # temporaries / slack
    base = state_bytes + resident_io + weight_bytes + work_bytes
    a_full = n_pad * n_pad * bf16
    a_stream = 2 * tm * n_pad * bf16
    a_resident = (base + a_full) <= int(0.85 * cap)              # keep A in VMEM when it fits
    footprint = base + (a_full if a_resident else a_stream)
    vmem_limit = int(min(cap, max(32 * _MIB, int(1.25 * footprint))))

    split_update = _is_v5e()

    flops = num_layers * (2 * n_pad * n_pad * hdim + 2 * n_pad * (2 * hdim) * hdim)
    bytes_accessed = ((a_full if a_resident else num_layers * n_pad * n_pad * bf16)
                      + 3 * n_pad * hdim * bf16
                      + num_layers * ((2 * hdim) * hdim * bf16 + hdim * f32))
    cost = pl.CostEstimate(flops=flops, transcendentals=0, bytes_accessed=bytes_accessed)

    if a_resident:
        a_spec = pl.BlockSpec(memory_space=pltpu.MemorySpace.VMEM)     # full A, DMA'd once
    else:
        a_spec = pl.BlockSpec((tm, n_pad), lambda l, i: (i, 0))        # streamed row tiles

    kernel = functools.partial(_gcnii_layers_kernel, tm=tm, num_layers=num_layers,
                               a_resident=a_resident, split_update=split_update)
    return pl.pallas_call(
        kernel,
        out_shape=jax.ShapeDtypeStruct((n_pad, hdim), jnp.bfloat16),
        grid_spec=pltpu.PrefetchScalarGridSpec(
            num_scalar_prefetch=0,
            grid=(num_layers, num_row_tiles),
            in_specs=[
                a_spec,                                                   # A_hat (bf16)
                pl.BlockSpec(memory_space=pltpu.MemorySpace.VMEM),        # h0 resident, single copy
                pl.BlockSpec((1, 2 * hdim, hdim), lambda l, i: (l, 0, 0)),  # stacked weight, layer l
                pl.BlockSpec((1, 1, hdim), lambda l, i: (l, 0, 0)),       # bias, layer l
            ],
            out_specs=pl.BlockSpec(memory_space=pltpu.MemorySpace.VMEM),  # resident output, single copy
            scratch_shapes=[
                pltpu.VMEM((n_pad, hdim), jnp.bfloat16),   # h state, source for even layers
                pltpu.VMEM((n_pad, hdim), jnp.bfloat16),   # h state, source for odd layers
            ],
        ),
        # Row tiles share the resident h state => both axes must stay serial.
        # TODO(synk): on v7x, shard the row-tile axis across the 2 TCs with a per-layer barrier.
        compiler_params=pltpu.CompilerParams(
            dimension_semantics=("arbitrary", "arbitrary"),
            vmem_limit_bytes=vmem_limit),
        cost_estimate=cost,
    )(a_hat_bf16, h_init_bf16, w_stack_bf16, b_stack)


def linear_logsoftmax(x, w, b, *, tm):
    n, c_in = x.shape
    c_out = w.shape[1]
    assert n % tm == 0
    # Pad classes to a lane-dense width (128); padded logits get a huge negative bias so
    # they carry zero probability mass, and are sliced off afterwards.
    c_pad = max(_round_up(c_out, 128), 128)
    w_p = jnp.pad(w, ((0, 0), (0, c_pad - c_out))).astype(jnp.bfloat16)
    b_p = jnp.pad(b, ((0, 0), (0, c_pad - c_out)), constant_values=-1e30)
    out = pl.pallas_call(
        _linear_logsoftmax_kernel,
        out_shape=jax.ShapeDtypeStruct((n, c_pad), jnp.float32),
        grid_spec=pltpu.PrefetchScalarGridSpec(
            num_scalar_prefetch=0,
            grid=(n // tm,),
            in_specs=[
                pl.BlockSpec((tm, c_in), lambda i: (i, 0)),
                pl.BlockSpec((c_in, c_pad), lambda i: (0, 0)),
                pl.BlockSpec((1, c_pad), lambda i: (0, 0)),
            ],
            out_specs=pl.BlockSpec((tm, c_pad), lambda i: (i, 0)),
        ),
        compiler_params=pltpu.CompilerParams(dimension_semantics=("parallel",)),
    )(x, w_p, b_p)
    return out[:, :c_out]


# --------------------------------------------------------------------------- #
# Model glue (plain JAX): param init, adjacency normalization, forward
# --------------------------------------------------------------------------- #
def glorot(key, shape):
    fan_in, fan_out = shape
    limit = (6.0 / (fan_in + fan_out)) ** 0.5
    return jax.random.uniform(key, shape, jnp.float32, -limit, limit)


def init_params(key, in_channels, hidden, out_channels, num_layers):
    keys = jax.random.split(key, 2 * num_layers + 4)
    params = {
        "lin_in": (glorot(keys[0], (in_channels, hidden)),
                   jnp.zeros((1, hidden), jnp.float32)),
        "convs": [],
        "lin_out": (glorot(keys[1], (hidden, out_channels)),
                    jnp.zeros((1, out_channels), jnp.float32)),
    }
    for l in range(num_layers):
        w1 = glorot(keys[2 + 2 * l], (hidden, hidden))
        w2 = glorot(keys[3 + 2 * l], (hidden, hidden))
        b = jnp.zeros((1, hidden), jnp.float32)
        params["convs"].append((w1, w2, b))
    return params


def build_normalized_adjacency(key, num_nodes, num_edges):
    ks, kd = jax.random.split(key)
    src = jax.random.randint(ks, (num_edges,), 0, num_nodes)
    dst = jax.random.randint(kd, (num_edges,), 0, num_nodes)
    a = jnp.zeros((num_nodes, num_nodes), jnp.float32)
    a = a.at[src, dst].set(1.0)
    a = a.at[dst, src].set(1.0)
    a = a + jnp.eye(num_nodes, dtype=jnp.float32)          # self-loops
    deg = jnp.sum(a, axis=1)
    d_inv_sqrt = jnp.where(deg > 0, 1.0 / jnp.sqrt(deg), 0.0)
    return a * d_inv_sqrt[:, None] * d_inv_sqrt[None, :]   # D^-1/2 (A+I) D^-1/2


def gcnii_dense_forward(a_hat, x, params, alpha, *, tm=None):
    if tm is None:
        tm = 128 if _is_v5e() else 256      # v5e MXU is 4x128^2; v6e/v7x are 256-row
    n = x.shape[0]
    n_pad = _round_up(n, tm)
    # Zero-pad rows; padded A_hat rows/cols are zero so padded nodes never affect real ones.
    x_p = jnp.pad(x, ((0, n_pad - n), (0, 0)))
    a_p = jnp.pad(a_hat, ((0, n_pad - n), (0, n_pad - n))).astype(jnp.bfloat16)

    w_in, b_in = params["lin_in"]
    h = linear_relu(x_p, w_in, b_in, tm=tm)     # convs[0] + relu (dropout = identity, eval)

    if params["convs"]:
        hdim = h.shape[1]
        eye = jnp.eye(hdim, dtype=jnp.float32)
        # out = (1-a)p + (1-a)p@W1 + a*h0 + a*h0@W2 + b  ==  [p,h0] @ [(1-a)(I+W1); a(I+W2)] + b
        w_stack = jnp.stack([
            jnp.concatenate([(1.0 - alpha) * (eye + w1), alpha * (eye + w2)], axis=0)
            for (w1, w2, _) in params["convs"]
        ]).astype(jnp.bfloat16)                                    # (L, 2H, H)
        b_stack = jnp.stack([b for (_, _, b) in params["convs"]])  # (L, 1, H)
        h = gcnii_layers(a_p, h, w_stack, b_stack, tm=tm)

    w_out, b_out = params["lin_out"]
    out = linear_logsoftmax(h, w_out, b_out, tm=tm)
    return out[:n]


def reference_forward(a_hat, x, params, alpha):
    """Pure-JAX f32 reference of the original PyTorch forward (eval mode)."""
    w_in, b_in = params["lin_in"]
    h = jax.nn.relu(x @ w_in + b_in)
    h0 = h
    for (w1, w2, b) in params["convs"]:
        p = a_hat @ h
        support = (1.0 - alpha) * p
        initial = alpha * h0
        out = support + support @ w1 + initial + initial @ w2 + b
        h = jax.nn.relu(out) + h
    w_out, b_out = params["lin_out"]
    logits = h @ w_out + b_out
    return jax.nn.log_softmax(logits, axis=1)


# --------------------------------------------------------------------------- #
if __name__ == "__main__":
    N = 256            # number of graph nodes
    IN_CH = 64         # input feature dim
    HIDDEN = 128       # hidden_channels
    OUT_CH = 16        # out_channels (num classes)
    NUM_LAYERS = 4
    ALPHA = 0.1
    NUM_EDGES = 1024

    root = jax.random.PRNGKey(0)
    k_x, k_graph, k_params = jax.random.split(root, 3)

    x = jax.random.normal(k_x, (N, IN_CH), jnp.float32)
    a_hat = build_normalized_adjacency(k_graph, N, NUM_EDGES)
    params = init_params(k_params, IN_CH, HIDDEN, OUT_CH, NUM_LAYERS)

    out = gcnii_dense_forward(a_hat, x, params, ALPHA)
    out = jax.block_until_ready(out)

    assert out.shape == (N, OUT_CH)
    assert bool(jnp.all(jnp.isfinite(out)))
    # rows of log_softmax should sum (in prob space) to ~1
    assert bool(jnp.allclose(jnp.sum(jnp.exp(out), axis=1), 1.0, atol=1e-4))

    # Loose check against an f32 reference (kernel path uses bf16 state / MXU inputs).
    ref = reference_forward(a_hat, x, params, ALPHA)
    max_diff = float(jnp.max(jnp.abs(out - ref)))
    assert max_diff < 0.5, f"kernel deviates from reference: max |diff| = {max_diff}"

    print("KERNEL_OK")
</pallas_src>

<mosaic_0001>
module attributes {stable_mosaic.version = 11 : i64} {
  func.func @_linear_relu_kernel(%arg0: i32, %arg1: memref<256x64xf32, #tpu.memory_space<vmem>>, %arg2: memref<64x128xbf16, #tpu.memory_space<vmem>>, %arg3: memref<1x128xf32, #tpu.memory_space<vmem>>, %arg4: memref<256x128xbf16, #tpu.memory_space<vmem>>) attributes {dimension_semantics = [#tpu.dimension_semantics<parallel>], iteration_bounds = array<i64: 1>, scalar_prefetch = 0 : i64, scratch_operands = 0 : i64, tpu.core_type = #tpu.core_type<tc>, window_params = [{transform_indices = @transform_0, window_bounds = array<i64: 256, 64>}, {pipeline_mode = #tpu.pipeline_mode<synchronous>, transform_indices = @transform_1, window_bounds = array<i64: 64, 128>}, {pipeline_mode = #tpu.pipeline_mode<synchronous>, transform_indices = @transform_2, window_bounds = array<i64: 1, 128>}, {transform_indices = @transform_3, window_bounds = array<i64: 256, 128>}]} {
    %c0 = arith.constant 0 : index
    %c0_0 = arith.constant 0 : index
    %0 = vector.load %arg1[%c0, %c0_0] : memref<256x64xf32, #tpu.memory_space<vmem>>, vector<256x64xf32>
    %1 = arith.truncf %0 : vector<256x64xf32> to vector<256x64xbf16>
    %c0_1 = arith.constant 0 : index
    %c0_2 = arith.constant 0 : index
    %2 = vector.load %arg2[%c0_1, %c0_2] : memref<64x128xbf16, #tpu.memory_space<vmem>>, vector<64x128xbf16>
    %cst = arith.constant dense<0.000000e+00> : vector<256x128xf32>
    %3 = tpu.matmul %1, %2, %cst {dimension_numbers = #tpu.dot_dimension_numbers<[1], [0], [0], [1], [0, 0, 1, 1], [], []>} : vector<256x64xbf16>, vector<64x128xbf16>, vector<256x128xf32> -> vector<256x128xf32>
    %c0_3 = arith.constant 0 : index
    %c0_4 = arith.constant 0 : index
    %4 = vector.load %arg3[%c0_3, %c0_4] : memref<1x128xf32, #tpu.memory_space<vmem>>, vector<1x128xf32>
    %5 = vector.broadcast %4 : vector<1x128xf32> to vector<256x128xf32>
    %6 = arith.addf %3, %5 : vector<256x128xf32>
    %cst_5 = arith.constant 0.000000e+00 : f32
    %7 = vector.broadcast %cst_5 : f32 to vector<256x128xf32>
    %8 = arith.maximumf %6, %7 : vector<256x128xf32>
    %9 = arith.truncf %8 : vector<256x128xf32> to vector<256x128xbf16>
    %c0_6 = arith.constant 0 : index
    %c0_7 = arith.constant 0 : index
    %10 = vector.load %arg4[%c0_6, %c0_7] : memref<256x128xbf16, #tpu.memory_space<vmem>>, vector<256x128xbf16>
    tpu.vector_store %arg4[%c0_6, %c0_7], %9 {strides = array<i32>} : memref<256x128xbf16, #tpu.memory_space<vmem>>, vector<256x128xbf16>,
    return
  }
  func.func @transform_0(%arg0: i32) -> (i32, i32) {
    %c0_i32 = arith.constant 0 : i32
    %c0_i32_0 = arith.constant 0 : i32
    return %arg0, %c0_i32 : i32, i32
  }
  func.func @transform_1(%arg0: i32) -> (i32, i32) {
    %c0_i32 = arith.constant 0 : i32
    %c0_i32_0 = arith.constant 0 : i32
    %c0_i32_1 = arith.constant 0 : i32
    return %c0_i32, %c0_i32_0 : i32, i32
  }
  func.func @transform_2(%arg0: i32) -> (i32, i32) {
    %c0_i32 = arith.constant 0 : i32
    %c0_i32_0 = arith.constant 0 : i32
    %c0_i32_1 = arith.constant 0 : i32
    return %c0_i32, %c0_i32_0 : i32, i32
  }
  func.func @transform_3(%arg0: i32) -> (i32, i32) {
    %c0_i32 = arith.constant 0 : i32
    %c0_i32_0 = arith.constant 0 : i32
    return %arg0, %c0_i32 : i32, i32
  }
}

</mosaic_0001>

<bundles_post_ra>
// kernel: tpu_custom_call.1
= control target key start
LH: loop header
LB: loop body
LE: loop exit
PB: predicated region body
PF: predicated region fallthrough
CT: control target
= control target key end

     0   :  { %vm103_vm0 = vcmask 523264   ;;  %s985_s0 = inlined_call_operand.vmem [shape: f32[256,64], index: 0, kind: input, shape index: {}]   ;;  %s986_s1 = inlined_call_operand.vmem [shape: bf16[64,128], index: 1, kind: input, shape index: {}]   ;;  %s987_s2 = inlined_call_operand.vmem [shape: f32[1,128], index: 2, kind: input, shape index: {}]   ;;  %s988_s3 = inlined_call_operand.hbm [shape: bf16[256,128], index: 3, kind: output, shape index: {}]  }
   0x1   :  { %v772_v0 = vld [vmem:[%s986_s1 + $0x18] sm:$0xff]   ;;  %v773_v1 = vld [vmem:[%s986_s1 + $0x10] sm:$0xff]   ;;  %v774_v2 = vld [vmem:[%s986_s1 + $0x8] sm:$0xff]  }
   0x2   :  { %721 = vmatprep.subr.bf16.mxu0 %v772_v0  ;;  %761 = vmatprep.subr.bf16.mxu1 %v772_v0  ;;  %v16_v3 = vld [vmem:[%s985_s0] sm:$0xff]  ;;  %v17_v4 = vld [vmem:[%s985_s0 + $0x8] sm:$0xff]  ;;  %v18_v10 = vld [vmem:[%s985_s0 + $0x10] sm:$0xff] }
   0x3   :  { %722 = vmatpush3.bf16.msra.mxu0 %v772_v0  ;;  %765 = vmatpush3.bf16.msra.mxu1 %v772_v0  ;;  %v32_v5 = vld [vmem:[%s985_s0 + $0x80] sm:$0xff]  ;;  %v48_v6 = vpack.c.bf16 %v17_v4, %v16_v3  ;;  %v33_v7 = vld [vmem:[%s985_s0 + $0x88] sm:$0xff]  ;;  %v19_v11 = vld [vmem:[%s985_s0 + $0x18] sm:$0xff] }
   0x4   :  { %723 = vmatprep.subr.bf16.mxu0 %v773_v1  ;;  %762 = vmatprep.subr.bf16.mxu1 %v773_v1  ;;  %v56_v8 = vpack.c.bf16 %v33_v7, %v32_v5  ;;  %v775_v9 = vld [vmem:[%s986_s1] sm:$0xff]   ;;  %v34_v12 = vld [vmem:[%s985_s0 + $0x90] sm:$0xff]  ;;  %v35_v13 = vld [vmem:[%s985_s0 + $0x98] sm:$0xff]  ;;  %v49_v18 = vpack.c.bf16 %v19_v11, %v18_v10 }
   0x5   :  { %729 = vmatprep.mubr.msk.bf16.mxu0 %vm103_vm0, %v48_v6  ;;  %v20_v14 = vld [vmem:[%s985_s0 + $0x20] sm:$0xff]  ;;  %v21_v15 = vld [vmem:[%s985_s0 + $0x28] sm:$0xff]  ;;  %v57_v19 = vpack.c.bf16 %v35_v13, %v34_v12 }
   0x6   :  { %745 = vmatprep.mubr.msk.bf16.mxu1 %vm103_vm0, %v56_v8  ;;  %v36_v16 = vld [vmem:[%s985_s0 + $0xa0] sm:$0xff]  ;;  %v37_v17 = vld [vmem:[%s985_s0 + $0xa8] sm:$0xff] }
   0x7   :  { %724 = vmatpush3.bf16.msra.mxu0 %v773_v1  ;;  %766 = vmatpush3.bf16.msra.mxu1 %v773_v1 }
   0x8   :  { %725 = vmatprep.subr.bf16.mxu0 %v774_v2  ;;  %763 = vmatprep.subr.bf16.mxu1 %v774_v2 }
   0xb   :  { %726 = vmatpush3.bf16.msra.mxu0 %v774_v2  ;;  %767 = vmatpush3.bf16.msra.mxu1 %v774_v2 }
   0xc   :  { %727 = vmatprep.subr.bf16.mxu0 %v775_v9  ;;  %764 = vmatprep.subr.bf16.mxu1 %v775_v9 }
   0xd   :  { %8 = vsyncpa [#allocation3], 0  ;;  %v50_v20 = vpack.c.bf16 %v21_v15, %v20_v14  ;;  %v58_v21 = vpack.c.bf16 %v37_v17, %v36_v16  ;;  %v22_v22 = vld [vmem:[%s985_s0 + $0x30] sm:$0xff]  ;;  %v23_v23 = vld [vmem:[%s985_s0 + $0x38] sm:$0xff] }
   0xe   :  { %v38_v24 = vld [vmem:[%s985_s0 + $0xb0] sm:$0xff]  ;;  %v39_v25 = vld [vmem:[%s985_s0 + $0xb8] sm:$0xff]  ;;  %v24_v26 = vld [vmem:[%s985_s0 + $0x40] sm:$0xff]  ;;  %v51_v30 = vpack.c.bf16 %v23_v23, %v22_v22 }
   0xf   :  { %728 = vmatpush3.bf16.msra.mxu0 %v775_v9  ;;  %768 = vmatpush3.bf16.msra.mxu1 %v775_v9  ;;  %v25_v27 = vld [vmem:[%s985_s0 + $0x48] sm:$0xff]  ;;  %v40_v28 = vld [vmem:[%s985_s0 + $0xc0] sm:$0xff]  ;;  %v59_v31 = vpack.c.bf16 %v39_v25, %v38_v24  ;;  %v26_v34 = vld [vmem:[%s985_s0 + $0x50] sm:$0xff] }
  0x10   :  { %v41_v29 = vld [vmem:[%s985_s0 + $0xc8] sm:$0xff]  ;;  %v52_v32 = vpack.c.bf16 %v25_v27, %v24_v26  ;;  %v27_v35 = vld [vmem:[%s985_s0 + $0x58] sm:$0xff]  ;;  %v42_v36 = vld [vmem:[%s985_s0 + $0xd0] sm:$0xff] }
  0x11   :  { %v60_v33 = vpack.c.bf16 %v41_v29, %v40_v28  ;;  %v43_v37 = vld [vmem:[%s985_s0 + $0xd8] sm:$0xff]  ;;  %v28_v38 = vld [vmem:[%s985_s0 + $0x60] sm:$0xff]  ;;  %v29_v39 = vld [vmem:[%s985_s0 + $0x68] sm:$0xff]  ;;  %v53_v42 = vpack.c.bf16 %v27_v35, %v26_v34 }
  0x12   :  { %730 = vmatmul.mubr.msk.bf16.vlgmr.msra.gmra.mxu0 %vm103_vm0, %v49_v18  ;;  %746 = vmatmul.mubr.msk.bf16.vlgmr.msra.gmra.mxu1 %vm103_vm0, %v57_v19  ;;  %v44_v40 = vld [vmem:[%s985_s0 + $0xe0] sm:$0xff]  ;;  %v45_v41 = vld [vmem:[%s985_s0 + $0xe8] sm:$0xff]  ;;  %v61_v43 = vpack.c.bf16 %v43_v37, %v42_v36  ;;  %v54_v44 = vpack.c.bf16 %v29_v39, %v28_v38  ;;  %v30_v46 = vld [vmem:[%s985_s0 + $0x70] sm:$0xff] }
  0x13   :  { %733 = vmatprep.mubr.msk.bf16.mxu0 %vm103_vm0, %v50_v20  ;;  %749 = vmatprep.mubr.msk.bf16.mxu1 %vm103_vm0, %v58_v21  ;;  %v62_v45 = vpack.c.bf16 %v45_v41, %v44_v40  ;;  %v31_v47 = vld [vmem:[%s985_s0 + $0x78] sm:$0xff]  ;;  %v46_v48 = vld [vmem:[%s985_s0 + $0xf0] sm:$0xff]  ;;  %v948_v52 = vld [vmem:[%s987_s2] ss:$0 sm:$0xff] }
  0x14   :  { %v47_v49 = vld [vmem:[%s985_s0 + $0xf8] sm:$0xff]  ;;  %v55_v50 = vpack.c.bf16 %v31_v47, %v30_v46  ;;  %s798_s0 = smov [#allocation2]  }
  0x15   :  { %v63_v51 = vpack.c.bf16 %v47_v49, %v46_v48  ;;  %s510_s2 = sshll.u32 %s798_s0, 4  ;;  %s511_s2 = int_to_ptr.vmem [resolvable:$true] %s510_s2 }
  0x16   :  { %s776_s30 = scalar_lea.vmem %s511_s2, 2048  ;;  %p781_p1 = scmp.lt.s32.totalorder %s511_s2, %s511_s2 }
  0x17   :  { %p777_p0 = scmp.ne.s32.totalorder %s511_s2, %s776_s30  ;;  %p782_p2 = scmp.lt.s32.totalorder %s776_s30, %s776_s30 }
  0x19   :  { %p783_p3 = por %p782_p2, %p781_p1 }
  0x1a   :  { %734 = vmatmul.mubr.msk.bf16.gmra.mxu0 %vm103_vm0, %v51_v30  ;;  %750 = vmatmul.mubr.msk.bf16.gmra.mxu1 %vm103_vm0, %v59_v31 }
  0x1b   :  { %737 = vmatprep.mubr.msk.bf16.mxu0 %vm103_vm0, %v52_v32  ;;  %753 = vmatprep.mubr.msk.bf16.mxu1 %vm103_vm0, %v60_v33  ;;  %p784_p4 = pnand %p783_p3, %p777_p0 }
  0x22   :  { %738 = vmatmul.mubr.msk.bf16.gmra.mxu0 %vm103_vm0, %v53_v42  ;;  %754 = vmatmul.mubr.msk.bf16.gmra.mxu1 %vm103_vm0, %v61_v43 }
  0x23   :  { %741 = vmatprep.mubr.msk.bf16.mxu0 %vm103_vm0, %v54_v44  ;;  %757 = vmatprep.mubr.msk.bf16.mxu1 %vm103_vm0, %v62_v45 }
  0x2a   :  { %742 = vmatmul.mubr.msk.bf16.gmra.mxu0 %vm103_vm0, %v55_v50  ;;  %758 = vmatmul.mubr.msk.bf16.gmra.mxu1 %vm103_vm0, %v63_v51 }
  0xd2   :  { %v731_v53 = vpop.f32.mrf.mxu0  ;;  %v747_v54 = vpop.f32.mrf.mxu1 }
  0xd3   :  { %v195_v55 = vadd.f32 %v731_v53, %v948_v52  ;;  %v259_v56 = vadd.f32 %v747_v54, %v948_v52 }
  0xd4   :  { %v186_v57 = vpop.f32.mrf.mxu0  ;;  %v250_v58 = vpop.f32.mrf.mxu1 }
  0xd5   :  { %v187_v59 = vadd.f32 %v948_v52, %v186_v57  ;;  %v251_v60 = vadd.f32 %v948_v52, %v250_v58  ;;  %v315_v1 = vmax.f32 %v195_v55, 0.0  ;;  %v331_v2 = vmax.f32 %v259_v56, 0.0 }
  0xd6   :  { %v732_v61 = vpop.f32.mrf.mxu0  ;;  %v748_v62 = vpop.f32.mrf.mxu1 }
  0xd7   :  { %v198_v63 = vadd.f32 %v732_v61, %v948_v52  ;;  %v262_v0 = vadd.f32 %v748_v62, %v948_v52  ;;  %v313_v9 = vmax.f32 %v187_v59, 0.0  ;;  %v329_v10 = vmax.f32 %v251_v60, 0.0 }
  0xd8   :  { %v189_v3 = vpop.f32.mrf.mxu0  ;;  %v253_v4 = vpop.f32.mrf.mxu1 }
  0xd9   :  { %v316_v5 = vmax.f32 %v198_v63, 0.0  ;;  %v332_v6 = vmax.f32 %v262_v0, 0.0  ;;  %v190_v7 = vadd.f32 %v948_v52, %v189_v3  ;;  %v254_v8 = vadd.f32 %v948_v52, %v253_v4 }
  0xda   :  { %v735_v11 = vpop.f32.mrf.mxu0  ;;  %v751_v12 = vpop.f32.mrf.mxu1 }
  0xdb   :  { %v614_v13 = vpack.c.bf16 %v316_v5, %v315_v1  ;;  %v654_v14 = vpack.c.bf16 %v332_v6, %v331_v2  ;;  %v314_v15 = vmax.f32 %v190_v7, 0.0  ;;  %v330_v16 = vmax.f32 %v254_v8, 0.0 }
  0xdc   :  { %v211_v17 = vadd.f32 %v735_v11, %v948_v52  ;;  %v275_v18 = vadd.f32 %v751_v12, %v948_v52  ;;  %v202_v19 = vpop.f32.mrf.mxu0  ;;  %v266_v20 = vpop.f32.mrf.mxu1 }
  0xdd   :  { %686 = vst [vmem:[#allocation2 + $0x8] sm:$0xff] %v614_v13   ;;  %694 = vst [vmem:[#allocation2 + $0x48] sm:$0xff] %v654_v14   ;;  %v609_v21 = vpack.c.bf16 %v314_v15, %v313_v9  ;;  %v649_v22 = vpack.c.bf16 %v330_v16, %v329_v10  ;;  %v203_v23 = vadd.f32 %v948_v52, %v202_v19 }
  0xde   :  { %v267_v24 = vadd.f32 %v948_v52, %v266_v20  ;;  %v736_v25 = vpop.f32.mrf.mxu0  ;;  %v752_v26 = vpop.f32.mrf.mxu1  ;;  %v319_v29 = vmax.f32 %v211_v17, 0.0  ;;  %v335_v30 = vmax.f32 %v275_v18, 0.0 }
  0xdf   :  { %610 = vst [vmem:[#allocation2] sm:$0xff] %v609_v21   ;;  %693 = vst [vmem:[#allocation2 + $0x40] sm:$0xff] %v649_v22   ;;  %v214_v27 = vadd.f32 %v736_v25, %v948_v52  ;;  %v278_v28 = vadd.f32 %v752_v26, %v948_v52  ;;  %v317_v37 = vmax.f32 %v203_v23, 0.0 }
  0xe0   :  { %v205_v31 = vpop.f32.mrf.mxu0  ;;  %v269_v32 = vpop.f32.mrf.mxu1  ;;  %v333_v38 = vmax.f32 %v267_v24, 0.0 }
  0xe1   :  { %v320_v33 = vmax.f32 %v214_v27, 0.0  ;;  %v336_v34 = vmax.f32 %v278_v28, 0.0  ;;  %v206_v35 = vadd.f32 %v948_v52, %v205_v31  ;;  %v270_v36 = vadd.f32 %v948_v52, %v269_v32 }
  0xe2   :  { %v739_v39 = vpop.f32.mrf.mxu0  ;;  %v755_v40 = vpop.f32.mrf.mxu1 }
  0xe3   :  { %v624_v41 = vpack.c.bf16 %v320_v33, %v319_v29  ;;  %v664_v42 = vpack.c.bf16 %v336_v34, %v335_v30  ;;  %v318_v43 = vmax.f32 %v206_v35, 0.0  ;;  %v334_v44 = vmax.f32 %v270_v36, 0.0 }
  0xe4   :  { %v227_v45 = vadd.f32 %v739_v39, %v948_v52  ;;  %v291_v46 = vadd.f32 %v755_v40, %v948_v52  ;;  %v218_v47 = vpop.f32.mrf.mxu0  ;;  %v282_v48 = vpop.f32.mrf.mxu1 }
  0xe5   :  { %688 = vst [vmem:[#allocation2 + $0x18] sm:$0xff] %v624_v41   ;;  %696 = vst [vmem:[#allocation2 + $0x58] sm:$0xff] %v664_v42   ;;  %v619_v49 = vpack.c.bf16 %v318_v43, %v317_v37  ;;  %v659_v50 = vpack.c.bf16 %v334_v44, %v333_v38  ;;  %v219_v51 = vadd.f32 %v948_v52, %v218_v47 }
  0xe6   :  { %v283_v53 = vadd.f32 %v948_v52, %v282_v48  ;;  %v740_v54 = vpop.f32.mrf.mxu0  ;;  %v756_v55 = vpop.f32.mrf.mxu1  ;;  %v323_v58 = vmax.f32 %v227_v45, 0.0  ;;  %v339_v59 = vmax.f32 %v291_v46, 0.0 }
  0xe7   :  { %687 = vst [vmem:[#allocation2 + $0x10] sm:$0xff] %v619_v49   ;;  %695 = vst [vmem:[#allocation2 + $0x50] sm:$0xff] %v659_v50   ;;  %v230_v56 = vadd.f32 %v740_v54, %v948_v52  ;;  %v294_v57 = vadd.f32 %v756_v55, %v948_v52  ;;  %v321_v2 = vmax.f32 %v219_v51, 0.0 }
  0xe8   :  { %v221_v60 = vpop.f32.mrf.mxu0  ;;  %v285_v61 = vpop.f32.mrf.mxu1  ;;  %v337_v3 = vmax.f32 %v283_v53, 0.0 }
  0xe9   :  { %v324_v62 = vmax.f32 %v230_v56, 0.0  ;;  %v340_v63 = vmax.f32 %v294_v57, 0.0  ;;  %v222_v0 = vadd.f32 %v948_v52, %v221_v60  ;;  %v286_v1 = vadd.f32 %v948_v52, %v285_v61 }
  0xea   :  { %v743_v4 = vpop.f32.mrf.mxu0  ;;  %v759_v5 = vpop.f32.mrf.mxu1 }
  0xeb   :  { %v634_v6 = vpack.c.bf16 %v324_v62, %v323_v58  ;;  %v674_v7 = vpack.c.bf16 %v340_v63, %v339_v59  ;;  %v322_v8 = vmax.f32 %v222_v0, 0.0  ;;  %v338_v9 = vmax.f32 %v286_v1, 0.0 }
  0xec   :  { %v243_v10 = vadd.f32 %v743_v4, %v948_v52  ;;  %v307_v11 = vadd.f32 %v759_v5, %v948_v52  ;;  %v234_v12 = vpop.f32.mrf.mxu0  ;;  %v298_v13 = vpop.f32.mrf.mxu1 }
  0xed   :  { %690 = vst [vmem:[#allocation2 + $0x28] sm:$0xff] %v634_v6   ;;  %698 = vst [vmem:[#allocation2 + $0x68] sm:$0xff] %v674_v7   ;;  %v629_v14 = vpack.c.bf16 %v322_v8, %v321_v2  ;;  %v669_v15 = vpack.c.bf16 %v338_v9, %v337_v3  ;;  %v235_v16 = vadd.f32 %v948_v52, %v234_v12 }
  0xee   :  { %v299_v17 = vadd.f32 %v948_v52, %v298_v13  ;;  %v744_v18 = vpop.f32.mrf.mxu0  ;;  %v760_v19 = vpop.f32.mrf.mxu1  ;;  %v327_v22 = vmax.f32 %v243_v10, 0.0  ;;  %v343_v23 = vmax.f32 %v307_v11, 0.0 }
  0xef   :  { %689 = vst [vmem:[#allocation2 + $0x20] sm:$0xff] %v629_v14   ;;  %697 = vst [vmem:[#allocation2 + $0x60] sm:$0xff] %v669_v15   ;;  %v246_v20 = vadd.f32 %v744_v18, %v948_v52  ;;  %v310_v21 = vadd.f32 %v760_v19, %v948_v52  ;;  %v325_v30 = vmax.f32 %v235_v16, 0.0 }
  0xf0   :  { %v237_v24 = vpop.f32.mrf.mxu0  ;;  %v301_v25 = vpop.f32.mrf.mxu1  ;;  %v341_v31 = vmax.f32 %v299_v17, 0.0 }
  0xf1   :  { %v328_v26 = vmax.f32 %v246_v20, 0.0  ;;  %v344_v27 = vmax.f32 %v310_v21, 0.0  ;;  %v238_v28 = vadd.f32 %v948_v52, %v237_v24  ;;  %v302_v29 = vadd.f32 %v948_v52, %v301_v25 }
  0xf3   :  { %v644_v32 = vpack.c.bf16 %v328_v26, %v327_v22  ;;  %v684_v33 = vpack.c.bf16 %v344_v27, %v343_v23  ;;  %v326_v34 = vmax.f32 %v238_v28, 0.0  ;;  %v342_v35 = vmax.f32 %v302_v29, 0.0 }
  0xf5   :  { %692 = vst [vmem:[#allocation2 + $0x38] sm:$0xff] %v644_v32   ;;  %700 = vst [vmem:[#allocation2 + $0x78] sm:$0xff] %v684_v33   ;;  %v639_v36 = vpack.c.bf16 %v326_v34, %v325_v30  ;;  %v679_v37 = vpack.c.bf16 %v342_v35, %v341_v31 }
  0xf7   :  { %691 = vst [vmem:[#allocation2 + $0x30] sm:$0xff] %v639_v36   ;;  %699 = vst [vmem:[#allocation2 + $0x70] sm:$0xff] %v679_v37  }
  0xf8   :  { %787 = shalt.err (!%p784_p4)
}
  0xf9   :  { %s799_s4 = smov 64   ;;  %s800_s5 = smov 4  }
  0xfa   :  { %516 = dma.vmem_to_hbm [thread:$0]  %s511_s2, 2048, %s988_s3, [#allocation3], %s799_s4, %s799_s4, %s800_s5  }
  0xfb   :  { %796 = dma.done.wait [#allocation3], 2048  }
  0xfc   :  { %797 = vsyncadd [#allocation3], 4294965248 }
  0xfd   :  { %520 = vsyncpa [#allocation3], 1 }

</bundles_post_ra>
